<compile_context>
chip_gen: v5e
topology: v5e:2x2
jax: 0.10.0
libtpu: 0.0.40
codegen_flags: <defaults>
</compile_context>

<pallas_src>
import functools

import jax
import jax.numpy as jnp
from jax.experimental import pallas as pl
from jax.experimental.pallas import tpu as pltpu

EPS = 1e-5  # nn.LayerNorm default


def _layernorm(x, g, b):
    mu = jnp.mean(x, axis=-1, keepdims=True)
    xc = x - mu
    var = jnp.mean(xc * xc, axis=-1, keepdims=True)
    return xc * jax.lax.rsqrt(var + EPS) * g + b


def gnn_kernel(num_layers, residual, l_norm,
               x_ref, adj_ref, gamma_ref, beta_ref, *rest):
    """Whole GNN forward in one grid step. rest = [wr_l, wn_l, b_l]*L + [o_ref]."""
    o_ref = rest[-1]
    wrefs = rest[:-1]

    adj = adj_ref[...]        # (N, N) f32, A[i, j] = #edges j->i  (sum aggregation)
    gamma = gamma_ref[...]    # (1, hidden)
    beta = beta_ref[...]      # (1, hidden)

    def conv(h, layer):
        wr = wrefs[3 * layer][...]       # (F_in, F_out) root weight
        wn = wrefs[3 * layer + 1][...]   # (F_in, F_out) neighbor weight
        bb = wrefs[3 * layer + 2][...]   # (1, F_out)
        agg = jnp.dot(adj, h, preferred_element_type=jnp.float32)   # sum_{j in N(i)} h_j
        return (jnp.dot(h, wr, preferred_element_type=jnp.float32)
                + jnp.dot(agg, wn, preferred_element_type=jnp.float32)
                + bb)

    # Input layer: conv -> ReLU -> LayerNorm -> (dropout = identity).
    h = conv(x_ref[...], 0)
    h = jnp.maximum(h, 0.0)
    if l_norm:
        h = _layernorm(h, gamma, beta)

    # Hidden layers: conv (+ residual) -> ReLU -> LayerNorm -> (dropout = identity).
    for layer in range(1, num_layers - 1):
        hc = conv(h, layer)
        h = hc + h if residual else hc
        h = jnp.maximum(h, 0.0)
        if l_norm:
            h = _layernorm(h, gamma, beta)

    # Output layer: raw conv (no activation / norm), single store.
    o_ref[...] = conv(h, num_layers - 1)


def gnn_forward(in_feat, edge_index, params, *, num_layers, residual=True, l_norm=True):
    N, _ = in_feat.shape
    # Host-side (free) prep: dense adjacency for sum aggregation. PyG convention:
    # edge_index[0]=source, edge_index[1]=target; message sum at the target node.
    src, dst = edge_index[0], edge_index[1]
    adj = jnp.zeros((N, N), jnp.float32).at[dst, src].add(1.0)

    args = [in_feat.astype(jnp.float32), adj,
            params["gamma"], params["beta"]]
    for l in range(num_layers):
        args += [params[f"wr{l}"], params[f"wn{l}"], params[f"b{l}"]]
    out_dim = params[f"wr{num_layers - 1}"].shape[1]

    vmem_full = pl.BlockSpec(memory_space=pltpu.MemorySpace.VMEM)  # whole array, VMEM-resident

    return pl.pallas_call(
        functools.partial(gnn_kernel, num_layers, residual, l_norm),
        out_shape=jax.ShapeDtypeStruct((N, out_dim), jnp.float32),
        in_specs=[vmem_full] * len(args),
        out_specs=vmem_full,
    )(*args)


def init_params(key, input_dim, hidden_dim, out_dim, num_layers):
    dims = [input_dim] + [hidden_dim] * (num_layers - 1) + [out_dim]
    p = {"gamma": jnp.ones((1, hidden_dim), jnp.float32),
         "beta": jnp.zeros((1, hidden_dim), jnp.float32)}
    keys = jax.random.split(key, 3 * num_layers)
    u = lambda k, shape, fan_in: jax.random.uniform(
        k, shape, jnp.float32, -1.0 / (fan_in ** 0.5), 1.0 / (fan_in ** 0.5))
    for l in range(num_layers):
        fi, fo = dims[l], dims[l + 1]
        p[f"wr{l}"] = u(keys[3 * l], (fi, fo), fi)
        p[f"wn{l}"] = u(keys[3 * l + 1], (fi, fo), fi)
        p[f"b{l}"] = u(keys[3 * l + 2], (1, fo), fi)
    return p


def reference(in_feat, edge_index, params, *, num_layers, residual=True, l_norm=True):
    N = in_feat.shape[0]
    adj = jnp.zeros((N, N), jnp.float32).at[edge_index[1], edge_index[0]].add(1.0)

    def conv(h, l):
        return (h @ params[f"wr{l}"] + (adj @ h) @ params[f"wn{l}"] + params[f"b{l}"])

    def ln(z):
        mu = z.mean(-1, keepdims=True)
        var = ((z - mu) ** 2).mean(-1, keepdims=True)
        return (z - mu) / jnp.sqrt(var + EPS) * params["gamma"] + params["beta"]

    h = jnp.maximum(conv(in_feat, 0), 0.0)
    if l_norm:
        h = ln(h)
    for l in range(1, num_layers - 1):
        hc = conv(h, l)
        h = hc + h if residual else hc
        h = jnp.maximum(h, 0.0)
        if l_norm:
            h = ln(h)
    return conv(h, num_layers - 1)


if __name__ == "__main__":
    N, INPUT_DIM, HIDDEN_DIM, OUT_DIM, NUM_LAYERS = 16, 16, 32, 8, 3

    key = jax.random.PRNGKey(0)
    kx, kp = jax.random.split(key)

    in_feat = jax.random.normal(kx, (N, INPUT_DIM), jnp.float32)

    # Deterministic small graph: bidirectional ring plus stride-5 chords (48 edges).
    idx = jnp.arange(N, dtype=jnp.int32)
    src = jnp.concatenate([idx, (idx + 1) % N, idx])
    dst = jnp.concatenate([(idx + 1) % N, idx, (idx + 5) % N])
    edge_index = jnp.stack([src, dst])  # (2, 48)

    params = init_params(kp, INPUT_DIM, HIDDEN_DIM, OUT_DIM, NUM_LAYERS)

    out = jax.block_until_ready(
        gnn_forward(in_feat, edge_index, params,
                    num_layers=NUM_LAYERS, residual=True, l_norm=True))
    assert out.shape == (N, OUT_DIM)

    ref = reference(in_feat, edge_index, params,
                    num_layers=NUM_LAYERS, residual=True, l_norm=True)
    assert jnp.allclose(out, ref, rtol=1e-4, atol=1e-4), "kernel mismatch vs reference"

    print("KERNEL_OK")
</pallas_src>

<mosaic_0001>
module attributes {stable_mosaic.version = 11 : i64} {
  func.func @gnn_kernel(%arg0: memref<16x16xf32, #tpu.memory_space<vmem>>, %arg1: memref<16x16xf32, #tpu.memory_space<vmem>>, %arg2: memref<1x32xf32, #tpu.memory_space<vmem>>, %arg3: memref<1x32xf32, #tpu.memory_space<vmem>>, %arg4: memref<16x32xf32, #tpu.memory_space<vmem>>, %arg5: memref<16x32xf32, #tpu.memory_space<vmem>>, %arg6: memref<1x32xf32, #tpu.memory_space<vmem>>, %arg7: memref<32x32xf32, #tpu.memory_space<vmem>>, %arg8: memref<32x32xf32, #tpu.memory_space<vmem>>, %arg9: memref<1x32xf32, #tpu.memory_space<vmem>>, %arg10: memref<32x8xf32, #tpu.memory_space<vmem>>, %arg11: memref<32x8xf32, #tpu.memory_space<vmem>>, %arg12: memref<1x8xf32, #tpu.memory_space<vmem>>, %arg13: memref<16x8xf32, #tpu.memory_space<vmem>>) attributes {dimension_semantics = [], scalar_prefetch = 0 : i64, scratch_operands = 0 : i64, tpu.core_type = #tpu.core_type<tc>} {
    %c0 = arith.constant 0 : index
    %c0_0 = arith.constant 0 : index
    %0 = vector.load %arg1[%c0, %c0_0] : memref<16x16xf32, #tpu.memory_space<vmem>>, vector<16x16xf32>
    %c0_1 = arith.constant 0 : index
    %c0_2 = arith.constant 0 : index
    %1 = vector.load %arg2[%c0_1, %c0_2] : memref<1x32xf32, #tpu.memory_space<vmem>>, vector<1x32xf32>
    %c0_3 = arith.constant 0 : index
    %c0_4 = arith.constant 0 : index
    %2 = vector.load %arg3[%c0_3, %c0_4] : memref<1x32xf32, #tpu.memory_space<vmem>>, vector<1x32xf32>
    %c0_5 = arith.constant 0 : index
    %c0_6 = arith.constant 0 : index
    %3 = vector.load %arg0[%c0_5, %c0_6] : memref<16x16xf32, #tpu.memory_space<vmem>>, vector<16x16xf32>
    %c0_7 = arith.constant 0 : index
    %c0_8 = arith.constant 0 : index
    %4 = vector.load %arg4[%c0_7, %c0_8] : memref<16x32xf32, #tpu.memory_space<vmem>>, vector<16x32xf32>
    %c0_9 = arith.constant 0 : index
    %c0_10 = arith.constant 0 : index
    %5 = vector.load %arg5[%c0_9, %c0_10] : memref<16x32xf32, #tpu.memory_space<vmem>>, vector<16x32xf32>
    %c0_11 = arith.constant 0 : index
    %c0_12 = arith.constant 0 : index
    %6 = vector.load %arg6[%c0_11, %c0_12] : memref<1x32xf32, #tpu.memory_space<vmem>>, vector<1x32xf32>
    %cst = arith.constant dense<0.000000e+00> : vector<16x16xf32>
    %7 = tpu.matmul %0, %3, %cst {dimension_numbers = #tpu.dot_dimension_numbers<[1], [0], [0], [1], [0, 0, 1, 1], [], []>} : vector<16x16xf32>, vector<16x16xf32>, vector<16x16xf32> -> vector<16x16xf32>
    %cst_13 = arith.constant dense<0.000000e+00> : vector<16x32xf32>
    %8 = tpu.matmul %3, %4, %cst_13 {dimension_numbers = #tpu.dot_dimension_numbers<[1], [0], [0], [1], [0, 0, 1, 1], [], []>} : vector<16x16xf32>, vector<16x32xf32>, vector<16x32xf32> -> vector<16x32xf32>
    %cst_14 = arith.constant dense<0.000000e+00> : vector<16x32xf32>
    %9 = tpu.matmul %7, %5, %cst_14 {dimension_numbers = #tpu.dot_dimension_numbers<[1], [0], [0], [1], [0, 0, 1, 1], [], []>} : vector<16x16xf32>, vector<16x32xf32>, vector<16x32xf32> -> vector<16x32xf32>
    %10 = arith.addf %8, %9 : vector<16x32xf32>
    %11 = vector.broadcast %6 : vector<1x32xf32> to vector<16x32xf32>
    %12 = arith.addf %10, %11 : vector<16x32xf32>
    %cst_15 = arith.constant 0.000000e+00 : f32
    %13 = vector.broadcast %cst_15 : f32 to vector<16x32xf32>
    %14 = arith.maximumf %12, %13 : vector<16x32xf32>
    %cst_16 = arith.constant dense<0.000000e+00> : vector<16xf32>
    %15 = vector.multi_reduction <add>, %14, %cst_16 [1] : vector<16x32xf32> to vector<16xf32>
    %16 = vector.shape_cast %15 : vector<16xf32> to vector<16x1xf32>
    %cst_17 = arith.constant 3.200000e+01 : f32
    %17 = vector.broadcast %cst_17 : f32 to vector<16x1xf32>
    %18 = arith.divf %16, %17 : vector<16x1xf32>
    %19 = vector.broadcast %18 : vector<16x1xf32> to vector<16x32xf32>
    %20 = arith.subf %14, %19 : vector<16x32xf32>
    %21 = arith.mulf %20, %20 : vector<16x32xf32>
    %cst_18 = arith.constant dense<0.000000e+00> : vector<16xf32>
    %22 = vector.multi_reduction <add>, %21, %cst_18 [1] : vector<16x32xf32> to vector<16xf32>
    %23 = vector.shape_cast %22 : vector<16xf32> to vector<16x1xf32>
    %cst_19 = arith.constant 3.200000e+01 : f32
    %24 = vector.broadcast %cst_19 : f32 to vector<16x1xf32>
    %25 = arith.divf %23, %24 : vector<16x1xf32>
    %cst_20 = arith.constant 9.99999974E-6 : f32
    %26 = vector.broadcast %cst_20 : f32 to vector<16x1xf32>
    %27 = arith.addf %25, %26 : vector<16x1xf32>
    %28 = math.rsqrt %27 : vector<16x1xf32>
    %29 = vector.broadcast %28 : vector<16x1xf32> to vector<16x32xf32>
    %30 = arith.mulf %20, %29 : vector<16x32xf32>
    %31 = vector.broadcast %1 : vector<1x32xf32> to vector<16x32xf32>
    %32 = arith.mulf %30, %31 : vector<16x32xf32>
    %33 = vector.broadcast %2 : vector<1x32xf32> to vector<16x32xf32>
    %34 = arith.addf %32, %33 : vector<16x32xf32>
    %c0_21 = arith.constant 0 : index
    %c0_22 = arith.constant 0 : index
    %35 = vector.load %arg7[%c0_21, %c0_22] : memref<32x32xf32, #tpu.memory_space<vmem>>, vector<32x32xf32>
    %c0_23 = arith.constant 0 : index
    %c0_24 = arith.constant 0 : index
    %36 = vector.load %arg8[%c0_23, %c0_24] : memref<32x32xf32, #tpu.memory_space<vmem>>, vector<32x32xf32>
    %c0_25 = arith.constant 0 : index
    %c0_26 = arith.constant 0 : index
    %37 = vector.load %arg9[%c0_25, %c0_26] : memref<1x32xf32, #tpu.memory_space<vmem>>, vector<1x32xf32>
    %cst_27 = arith.constant dense<0.000000e+00> : vector<16x32xf32>
    %38 = tpu.matmul %0, %34, %cst_27 {dimension_numbers = #tpu.dot_dimension_numbers<[1], [0], [0], [1], [0, 0, 1, 1], [], []>} : vector<16x16xf32>, vector<16x32xf32>, vector<16x32xf32> -> vector<16x32xf32>
    %cst_28 = arith.constant dense<0.000000e+00> : vector<16x32xf32>
    %39 = tpu.matmul %34, %35, %cst_28 {dimension_numbers = #tpu.dot_dimension_numbers<[1], [0], [0], [1], [0, 0, 1, 1], [], []>} : vector<16x32xf32>, vector<32x32xf32>, vector<16x32xf32> -> vector<16x32xf32>
    %cst_29 = arith.constant dense<0.000000e+00> : vector<16x32xf32>
    %40 = tpu.matmul %38, %36, %cst_29 {dimension_numbers = #tpu.dot_dimension_numbers<[1], [0], [0], [1], [0, 0, 1, 1], [], []>} : vector<16x32xf32>, vector<32x32xf32>, vector<16x32xf32> -> vector<16x32xf32>
    %41 = arith.addf %39, %40 : vector<16x32xf32>
    %42 = vector.broadcast %37 : vector<1x32xf32> to vector<16x32xf32>
    %43 = arith.addf %41, %42 : vector<16x32xf32>
    %44 = arith.addf %43, %34 : vector<16x32xf32>
    %cst_30 = arith.constant 0.000000e+00 : f32
    %45 = vector.broadcast %cst_30 : f32 to vector<16x32xf32>
    %46 = arith.maximumf %44, %45 : vector<16x32xf32>
    %cst_31 = arith.constant dense<0.000000e+00> : vector<16xf32>
    %47 = vector.multi_reduction <add>, %46, %cst_31 [1] : vector<16x32xf32> to vector<16xf32>
    %48 = vector.shape_cast %47 : vector<16xf32> to vector<16x1xf32>
    %cst_32 = arith.constant 3.200000e+01 : f32
    %49 = vector.broadcast %cst_32 : f32 to vector<16x1xf32>
    %50 = arith.divf %48, %49 : vector<16x1xf32>
    %51 = vector.broadcast %50 : vector<16x1xf32> to vector<16x32xf32>
    %52 = arith.subf %46, %51 : vector<16x32xf32>
    %53 = arith.mulf %52, %52 : vector<16x32xf32>
    %cst_33 = arith.constant dense<0.000000e+00> : vector<16xf32>
    %54 = vector.multi_reduction <add>, %53, %cst_33 [1] : vector<16x32xf32> to vector<16xf32>
    %55 = vector.shape_cast %54 : vector<16xf32> to vector<16x1xf32>
    %cst_34 = arith.constant 3.200000e+01 : f32
    %56 = vector.broadcast %cst_34 : f32 to vector<16x1xf32>
    %57 = arith.divf %55, %56 : vector<16x1xf32>
    %cst_35 = arith.constant 9.99999974E-6 : f32
    %58 = vector.broadcast %cst_35 : f32 to vector<16x1xf32>
    %59 = arith.addf %57, %58 : vector<16x1xf32>
    %60 = math.rsqrt %59 : vector<16x1xf32>
    %61 = vector.broadcast %60 : vector<16x1xf32> to vector<16x32xf32>
    %62 = arith.mulf %52, %61 : vector<16x32xf32>
    %63 = vector.broadcast %1 : vector<1x32xf32> to vector<16x32xf32>
    %64 = arith.mulf %62, %63 : vector<16x32xf32>
    %65 = vector.broadcast %2 : vector<1x32xf32> to vector<16x32xf32>
    %66 = arith.addf %64, %65 : vector<16x32xf32>
    %c0_36 = arith.constant 0 : index
    %c0_37 = arith.constant 0 : index
    %67 = vector.load %arg10[%c0_36, %c0_37] : memref<32x8xf32, #tpu.memory_space<vmem>>, vector<32x8xf32>
    %c0_38 = arith.constant 0 : index
    %c0_39 = arith.constant 0 : index
    %68 = vector.load %arg11[%c0_38, %c0_39] : memref<32x8xf32, #tpu.memory_space<vmem>>, vector<32x8xf32>
    %c0_40 = arith.constant 0 : index
    %c0_41 = arith.constant 0 : index
    %69 = vector.load %arg12[%c0_40, %c0_41] : memref<1x8xf32, #tpu.memory_space<vmem>>, vector<1x8xf32>
    %cst_42 = arith.constant dense<0.000000e+00> : vector<16x32xf32>
    %70 = tpu.matmul %0, %66, %cst_42 {dimension_numbers = #tpu.dot_dimension_numbers<[1], [0], [0], [1], [0, 0, 1, 1], [], []>} : vector<16x16xf32>, vector<16x32xf32>, vector<16x32xf32> -> vector<16x32xf32>
    %cst_43 = arith.constant dense<0.000000e+00> : vector<16x8xf32>
    %71 = tpu.matmul %66, %67, %cst_43 {dimension_numbers = #tpu.dot_dimension_numbers<[1], [0], [0], [1], [0, 0, 1, 1], [], []>} : vector<16x32xf32>, vector<32x8xf32>, vector<16x8xf32> -> vector<16x8xf32>
    %cst_44 = arith.constant dense<0.000000e+00> : vector<16x8xf32>
    %72 = tpu.matmul %70, %68, %cst_44 {dimension_numbers = #tpu.dot_dimension_numbers<[1], [0], [0], [1], [0, 0, 1, 1], [], []>} : vector<16x32xf32>, vector<32x8xf32>, vector<16x8xf32> -> vector<16x8xf32>
    %73 = arith.addf %71, %72 : vector<16x8xf32>
    %74 = vector.broadcast %69 : vector<1x8xf32> to vector<16x8xf32>
    %75 = arith.addf %73, %74 : vector<16x8xf32>
    %c0_45 = arith.constant 0 : index
    %c0_46 = arith.constant 0 : index
    %76 = vector.load %arg13[%c0_45, %c0_46] : memref<16x8xf32, #tpu.memory_space<vmem>>, vector<16x8xf32>
    tpu.vector_store %arg13[%c0_45, %c0_46], %75 {strides = array<i32>} : memref<16x8xf32, #tpu.memory_space<vmem>>, vector<16x8xf32>,
    return
  }
}

</mosaic_0001>

<bundles_post_ra>
// kernel: tpu_custom_call.1
= control target key start
LH: loop header
LB: loop body
LE: loop exit
PB: predicated region body
PF: predicated region fallthrough
CT: control target
= control target key end

     0   :  { %18 = vsyncpa [#allocation3], 0  ;;  %s887_s0 = inlined_call_operand.hbm [shape: f32[16,16], index: 0, kind: input, shape index: {}]   ;;  %s888_s1 = inlined_call_operand.hbm [shape: f32[16,16], index: 1, kind: input, shape index: {}]   ;;  %s889_s2 = inlined_call_operand.vmem [shape: f32[1,32], index: 2, kind: input, shape index: {}]   ;;  %s890_s3 = inlined_call_operand.vmem [shape: f32[1,32], index: 3, kind: input, shape index: {}]   ;;  %s891_s4 = inlined_call_operand.hbm [shape: f32[16,32], index: 4, kind: input, shape index: {}]   ;;  %s892_s5 = inlined_call_operand.hbm [shape: f32[16,32], index: 5, kind: input, shape index: {}]   ;;  %s893_s6 = inlined_call_operand.vmem [shape: f32[1,32], index: 6, kind: input, shape index: {}]   ;;  %s894_s7 = inlined_call_operand.vmem [shape: f32[32,32], index: 7, kind: input, shape index: {}]   ;;  %s895_s8 = inlined_call_operand.vmem [shape: f32[32,32], index: 8, kind: input, shape index: {}]   ;;  %s896_s9 = inlined_call_operand.vmem [shape: f32[1,32], index: 9, kind: input, shape index: {}]   ;;  %s897_s10 = inlined_call_operand.vmem [shape: f32[32,8], index: 10, kind: input, shape index: {}]   ;;  %s898_s11 = inlined_call_operand.vmem [shape: f32[32,8], index: 11, kind: input, shape index: {}]   ;;  %s899_s12 = inlined_call_operand.vmem [shape: f32[1,8], index: 12, kind: input, shape index: {}]   ;;  %s900_s13 = inlined_call_operand.vmem [shape: f32[16,8], index: 13, kind: output, shape index: {}]  }
   0x1   :  { %19 = vsyncpa [#allocation5], 0 }
   0x2   :  { %20 = vsyncpa [#allocation8], 0  ;;  %s38_s27 = sshll.u32 %s888_s1, 4  ;;  %s671_s28 = smov [#allocation4]   ;;  %s39_s27 = int_to_ptr.hbm [resolvable:$true] %s38_s27 }
   0x3   :  { %s40_s29 = sshll.u32 %s671_s28, 4  ;;  %s25_s15 = sshll.u32 %s887_s0, 4  ;;  %s41_s29 = int_to_ptr.vmem [resolvable:$true] %s40_s29  ;;  %s26_s15 = int_to_ptr.hbm [resolvable:$true] %s25_s15 }
   0x4   :  { %s672_s16 = smov 128   ;;  %s673_s17 = smov 8  }
   0x5   :  { %46 = dma.hbm_to_vmem [thread:$0]  %s39_s27, 256, %s41_s29, [#allocation5], %s672_s16, %s672_s16, %s673_s17  }
   0x6   :  { %s674_s18 = smov [#allocation2]   ;;  %s55_s22 = sshll.u32 %s891_s4, 4  ;;  %s56_s22 = int_to_ptr.hbm [resolvable:$true] %s55_s22 }
   0x7   :  { %s27_s19 = sshll.u32 %s674_s18, 4  ;;  %s68_s24 = sshll.u32 %s892_s5, 4  ;;  %s28_s19 = int_to_ptr.vmem [resolvable:$true] %s27_s19  ;;  %s69_s24 = int_to_ptr.hbm [resolvable:$true] %s68_s24 }
   0x8   :  { %33 = dma.hbm_to_vmem [thread:$0]  %s26_s15, 256, %s28_s19, [#allocation3], %s672_s16, %s672_s16, %s673_s17  }
   0x9   :  { %s675_s25 = smov [#allocation6]   ;;  %s676_s0 = smov [#allocation7]  }
   0xa   :  { %s57_s26 = sshll.u32 %s675_s25, 4  ;;  %s70_s27 = sshll.u32 %s676_s0, 4  ;;  %s58_s26 = int_to_ptr.vmem [resolvable:$true] %s57_s26  ;;  %s71_s27 = int_to_ptr.vmem [resolvable:$true] %s70_s27 }
   0xb   :  { %63 = dma.hbm_to_vmem [thread:$0]  %s56_s22, 256, %s58_s26, [#allocation5], %s672_s16, %s672_s16, %s673_s17  }
   0xc   :  { %76 = dma.hbm_to_vmem [thread:$0]  %s69_s24, 256, %s71_s27, [#allocation8], %s672_s16, %s672_s16, %s673_s17  }
   0xd   :  { %665 = dma.done.wait [#allocation3], 256  }
   0xe   :  { %666 = vsyncadd [#allocation3], 4294967040 }
   0xf   :  { %667 = dma.done.wait [#allocation5], 512  }
  0x10   :  { %668 = vsyncadd [#allocation5], 4294966784 }
  0x11   :  { %669 = dma.done.wait [#allocation8], 256  }
  0x12   :  { %670 = vsyncadd [#allocation8], 4294967040  ;;  %v112_v0 = vld [vmem:[#allocation2 + $0x8] sm:$0xff]  ;;  %v111_v1 = vld [vmem:[#allocation2] sm:$0xff]  ;;  %vm118_vm0 = vcmask 130048   ;;  %vm213_vm1 = vcmask 261120  }
  0x13   :  { %v760_v2 = vld [vmem:[#allocation4] sm:$0xff]  ;;  %139 = vmatpush.msra.mxu0 %v112_v0  ;;  %545 = vmatpush.msra.mxu1 %v112_v0  ;;  %v762_v3 = vld [vmem:[#allocation4 + $0x8] sm:$0xff]  ;;  %v114_v4 = vld [vmem:[#allocation6 + $0x8] sm:$0xff]  ;;  %v677_v23 = vmov 32.0   ;;  %vm517_vm15 = vcmask 64512  }
  0x14   :  { %v113_v5 = vld [vmem:[#allocation6] sm:$0xff]  ;;  %197 = vmatpush.msra.mxu2 %v114_v4  ;;  %v116_v6 = vld [vmem:[#allocation7 + $0x8] sm:$0xff]  ;;  %v115_v7 = vld [vmem:[#allocation7] sm:$0xff]  ;;  %559 = vrcp.f32 %v677_v23 }
  0x15   :  { %140 = vmatpush.msra.mxu0 %v111_v1  ;;  %546 = vmatpush.msra.mxu1 %v111_v1  ;;  %v554_v14 = vld [vmem:[%s893_s6] ss:$0 sm:$0xff]  ;;  %v278_v40 = vld [vmem:[%s894_s7 + $0x18] sm:$0xff]  ;;  %v277_v41 = vld [vmem:[%s894_s7 + $0x10] sm:$0xff] }
  0x16   :  { %527 = vmatmul.msk.f32.vlgmr.msra.gmra.mxu0 %vm118_vm0, %v760_v2  ;;  %528 = vmatmul.msk.f32.vlgmr.msra.gmra.mxu1 %vm118_vm0, %v762_v3  ;;  %v276_v42 = vld [vmem:[%s894_s7 + $0x8] sm:$0xff]  ;;  %v275_v45 = vld [vmem:[%s894_s7] sm:$0xff] }
  0x17   :  { %198 = vmatpush.msra.mxu2 %v113_v5  ;;  %168 = vmatpush.msrb.mxu1 %v116_v6  ;;  %v800_v58 = vld [vmem:[%s889_s2] ss:$0 sm:$0xff] }
  0x18   :  { %531 = vmatmul.msk.f32.vlgmr.msra.gmra.mxu2 %vm118_vm0, %v111_v1  ;;  %v805_v62 = vld [vmem:[%s890_s3] ss:$0 sm:$0xff] }
  0x19   :  { %169 = vmatpush.msrb.mxu1 %v115_v7 }
  0x1a   :  { %v560_v24 = vpop.eup %559 }
  0x1b   :  { %v221_v25 = vmul.f32 32.0, %v560_v24  ;;  %vm225_vm2 = vweird.f32 %v560_v24  ;;  %354 = vmatpush.msra.mxu1 %v278_v40 }
  0x1d   :  { %v222_v26 = vsub.f32 1.0, %v221_v25  ;;  %355 = vmatpush.msra.mxu1 %v277_v41 }
  0x1f   :  { %v223_v27 = vmul.f32 %v560_v24, %v222_v26  ;;  %356 = vmatpush.msra.mxu1 %v276_v42  ;;  %v425_v42 = vld [vmem:[%s897_s10 + $0x18] sm:$0xff] }
  0x20   :  { %532 = vmatmul.msk.f32.gmra.mxu2 %vm118_vm0, %v112_v0 }
  0x21   :  { %v224_v28 = vadd.f32 %v560_v24, %v223_v27  ;;  %357 = vmatpush.msra.mxu1 %v275_v45 }
  0x23   :  { %v777_v29 = vsel %vm225_vm2, %v560_v24, %v224_v28 }
  0x93   :  { %v142_v8 = vpop.f32.mrf.mxu0  ;;  %v145_v9 = vpop.f32.mrf.mxu1 }
  0x94   :  { %529 = vmatmul.msk.f32.vlgmr.msrb.gmra.mxu1 %vm118_vm0, %v142_v8 }
  0x9b   :  { %v200_v10 = vpop.f32.mrf.mxu2 }
  0x9c   :  { %530 = vmatmul.msk.f32.gmra.mxu1 %vm118_vm0, %v145_v9 }
  0xa3   :  { %v203_v12 = vpop.f32.mrf.mxu2 }
 0x111   :  { %v171_v11 = vpop.f32.mrf.mxu1 }
 0x112   :  { %v201_v16 = vadd.f32 %v200_v10, %v171_v11  ;;  %v282_v10 = vld [vmem:[%s895_s8 + $0x18] sm:$0xff]  ;;  %v281_v11 = vld [vmem:[%s895_s8 + $0x10] sm:$0xff] }
 0x113   :  { %325 = vmatpush.msrb.mxu0 %v282_v10 }
 0x114   :  { %v209_v19 = vadd.f32 %v554_v14, %v201_v16 }
 0x115   :  { %326 = vmatpush.msrb.mxu0 %v281_v11 }
 0x116   :  { %v211_v21 = vmax.f32 %v209_v19, 0.0 }
 0x118   :  { %v214_v22 = vsel %vm213_vm1, %v211_v21, 0.0 }
 0x119   :  { %v174_v13 = vpop.f32.mrf.mxu1 }
 0x11a   :  { %v204_v15 = vadd.f32 %v203_v12, %v174_v13  ;;  %v280_v12 = vld [vmem:[%s895_s8 + $0x8] sm:$0xff]  ;;  %v279_v13 = vld [vmem:[%s895_s8] sm:$0xff] }
 0x11b   :  { %327 = vmatpush.msrb.mxu0 %v280_v12  ;;  %v428_v12 = vld [vmem:[%s898_s11 + $0x10] sm:$0xff] }
 0x11c   :  { %v210_v17 = vadd.f32 %v554_v14, %v204_v15 }
 0x11d   :  { %328 = vmatpush.msrb.mxu0 %v279_v13 }
 0x11e   :  { %v212_v18 = vmax.f32 %v210_v17, 0.0 }
 0x11f   :  { %501 = vmatpush.msra.mxu0 %v425_v42 }
 0x120   :  { %v217_v20 = vsel %vm213_vm1, %v212_v18, 0.0 }
 0x121   :  { %218 = vadd.xlane.f32.xlu0 %v217_v20 }
 0x129   :  { %215 = vadd.xlane.f32.xlu0 %v214_v22 }
 0x194   :  { %v219_v30 = vpop.xlane.xlu0 %218 }
 0x195   :  { %v228_v31 = vmul.f32 %v777_v29, %v219_v30 }
 0x197   :  { %v230_v32 = vsub.f32 %v212_v18, %v228_v31 }
 0x199   :  { %v232_v33 = vmul.f32 %v230_v32, %v230_v32 }
 0x19b   :  { %v236_v34 = vsel %vm213_vm1, %v232_v33, 0.0 }
 0x19c   :  { %237 = vadd.xlane.f32.xlu1 %v236_v34  ;;  %v216_v35 = vpop.xlane.xlu0 %215 }
 0x19d   :  { %v227_v36 = vmul.f32 %v777_v29, %v216_v35 }
 0x19f   :  { %v229_v37 = vsub.f32 %v211_v21, %v227_v36  ;;  %v557_v21 = vld [vmem:[%s896_s9] ss:$0 sm:$0xff] }
 0x1a1   :  { %v231_v38 = vmul.f32 %v229_v37, %v229_v37 }
 0x1a3   :  { %v233_v39 = vsel %vm213_vm1, %v231_v38, 0.0 }
 0x1a4   :  { %234 = vadd.xlane.f32.xlu1 %v233_v39 }
 0x20f   :  { %v238_v43 = vpop.xlane.xlu1 %237 }
 0x210   :  { %v240_v44 = vmul.f32 %v238_v43, %v777_v29  ;;  %v424_v43 = vld [vmem:[%s897_s10 + $0x10] sm:$0xff] }
 0x211   :  { %502 = vmatpush.msra.mxu0 %v424_v43 }
 0x212   :  { %v242_v46 = vadd.f32 1e-05, %v240_v44  ;;  %v423_v44 = vld [vmem:[%s897_s10 + $0x8] sm:$0xff] }
 0x213   :  { %503 = vmatpush.msra.mxu0 %v423_v44 }
 0x214   :  { %561 = vrsqrt.f32 %v242_v46  ;;  %vm259_vm4 = vweird.f32 %v242_v46 }
 0x217   :  { %v235_v47 = vpop.xlane.xlu1 %234 }
 0x218   :  { %v239_v48 = vmul.f32 %v235_v47, %v777_v29  ;;  %v422_v47 = vld [vmem:[%s897_s10] sm:$0xff] }
 0x219   :  { %504 = vmatpush.msra.mxu0 %v422_v47 }
 0x21a   :  { %v562_v49 = vpop.eup %561  ;;  %v241_v50 = vadd.f32 1e-05, %v239_v48 }
 0x21b   :  { %v254_v51 = vmul.f32 %v562_v49, %v242_v46  ;;  %vm260_vm3 = vweird.f32 %v562_v49 }
 0x21c   :  { %563 = vrsqrt.f32 %v241_v50  ;;  %vm261_vm5 = vmor %vm259_vm4, %vm260_vm3  ;;  %vm249_vm7 = vweird.f32 %v241_v50 }
 0x21d   :  { %v255_v52 = vmul.f32 %v562_v49, %v254_v51 }
 0x21f   :  { %v256_v53 = vmul.f32 0.5, %v255_v52 }
 0x221   :  { %v257_v54 = vsub.f32 1.5, %v256_v53 }
 0x222   :  { %v564_v55 = vpop.eup %563 }
 0x223   :  { %v258_v56 = vmul.f32 %v562_v49, %v257_v54  ;;  %v244_v57 = vmul.f32 %v564_v55, %v241_v50  ;;  %vm250_vm6 = vweird.f32 %v564_v55 }
 0x224   :  { %vm251_vm8 = vmor %vm249_vm7, %vm250_vm6 }
 0x225   :  { %v262_v59 = vsel %vm261_vm5, %v562_v49, %v258_v56  ;;  %v245_v60 = vmul.f32 %v564_v55, %v244_v57 }
 0x226   :  { %v264_v61 = vmul.f32 %v262_v59, %v230_v32 }
 0x227   :  { %v246_v63 = vmul.f32 0.5, %v245_v60 }
 0x228   :  { %v269_v0 = vmul.f32 %v800_v58, %v264_v61 }
 0x229   :  { %v247_v1 = vsub.f32 1.5, %v246_v63 }
 0x22a   :  { %v274_v4 = vadd.f32 %v805_v62, %v269_v0 }
 0x22b   :  { %v248_v5 = vmul.f32 %v564_v55, %v247_v1 }
 0x22c   :  { %298 = vmatpush.msra.mxu3 %v274_v4 }
 0x22d   :  { %v252_v6 = vsel %vm251_vm8, %v564_v55, %v248_v5  ;;  %v429_v55 = vld [vmem:[%s898_s11 + $0x18] sm:$0xff] }
 0x22e   :  { %v263_v7 = vmul.f32 %v252_v6, %v229_v37 }
 0x230   :  { %v268_v8 = vmul.f32 %v800_v58, %v263_v7 }
 0x232   :  { %v273_v9 = vadd.f32 %v805_v62, %v268_v8 }
 0x234   :  { %299 = vmatpush.msra.mxu3 %v273_v9  ;;  %537 = vmatmul.msk.f32.vlgmr.msra.gmra.mxu1 %vm213_vm1, %v273_v9 }
 0x235   :  { %533 = vmatmul.msk.f32.vlgmr.msra.gmra.mxu3 %vm118_vm0, %v760_v2 }
 0x236   :  { %472 = vmatpush.msrb.mxu3 %v429_v55 }
 0x238   :  { %473 = vmatpush.msrb.mxu3 %v428_v12 }
 0x23c   :  { %538 = vmatmul.msk.f32.gmra.mxu1 %vm213_vm1, %v274_v4 }
 0x23d   :  { %534 = vmatmul.msk.f32.gmra.mxu3 %vm118_vm0, %v762_v3 }
 0x2b1   :  { %v359_v16 = vpop.f32.mrf.mxu1 }
 0x2b8   :  { %v301_v14 = vpop.f32.mrf.mxu3 }
 0x2b9   :  { %535 = vmatmul.msk.f32.vlgmr.msrb.gmra.mxu0 %vm213_vm1, %v301_v14  ;;  %v362_v18 = vpop.f32.mrf.mxu1  ;;  %v558_v14 = vld [vmem:[%s899_s12] ss:$0 sm:$0xff] }
 0x2c0   :  { %v304_v15 = vpop.f32.mrf.mxu3 }
 0x2c1   :  { %536 = vmatmul.msk.f32.gmra.mxu0 %vm213_vm1, %v304_v15 }
 0x336   :  { %v330_v17 = vpop.f32.mrf.mxu0 }
 0x337   :  { %v360_v20 = vadd.f32 %v359_v16, %v330_v17 }
 0x339   :  { %v368_v24 = vadd.f32 %v557_v21, %v360_v20 }
 0x33b   :  { %v370_v28 = vadd.f32 %v368_v24, %v273_v9 }
 0x33d   :  { %v372_v30 = vmax.f32 %v370_v28, 0.0 }
 0x33e   :  { %v333_v19 = vpop.f32.mrf.mxu0 }
 0x33f   :  { %v363_v22 = vadd.f32 %v362_v18, %v333_v19  ;;  %v374_v31 = vsel %vm213_vm1, %v372_v30, 0.0 }
 0x341   :  { %v369_v23 = vadd.f32 %v557_v21, %v363_v22 }
 0x343   :  { %v371_v25 = vadd.f32 %v369_v23, %v274_v4 }
 0x345   :  { %v373_v26 = vmax.f32 %v371_v25, 0.0 }
 0x347   :  { %v377_v27 = vsel %vm213_vm1, %v373_v26, 0.0 }
 0x348   :  { %378 = vadd.xlane.f32.xlu2 %v377_v27 }
 0x350   :  { %375 = vadd.xlane.f32.xlu2 %v374_v31 }
 0x3bb   :  { %v379_v32 = vpop.xlane.xlu2 %378 }
 0x3bc   :  { %v381_v33 = vmul.f32 %v379_v32, %v777_v29 }
 0x3be   :  { %v383_v34 = vsub.f32 %v373_v26, %v381_v33 }
 0x3c0   :  { %v385_v35 = vmul.f32 %v383_v34, %v383_v34 }
 0x3c2   :  { %v389_v36 = vsel %vm213_vm1, %v385_v35, 0.0 }
 0x3c3   :  { %390 = vadd.xlane.f32.xlu0 %v389_v36  ;;  %v376_v37 = vpop.xlane.xlu2 %375 }
 0x3c4   :  { %v380_v38 = vmul.f32 %v376_v37, %v777_v29 }
 0x3c6   :  { %v382_v39 = vsub.f32 %v372_v30, %v380_v38 }
 0x3c8   :  { %v384_v40 = vmul.f32 %v382_v39, %v382_v39 }
 0x3ca   :  { %v386_v41 = vsel %vm213_vm1, %v384_v40, 0.0 }
 0x3cb   :  { %387 = vadd.xlane.f32.xlu1 %v386_v41 }
 0x436   :  { %v391_v45 = vpop.xlane.xlu0 %390 }
 0x437   :  { %v393_v46 = vmul.f32 %v391_v45, %v777_v29 }
 0x439   :  { %v395_v48 = vadd.f32 1e-05, %v393_v46 }
 0x43b   :  { %565 = vrsqrt.f32 %v395_v48  ;;  %vm412_vm10 = vweird.f32 %v395_v48 }
 0x43e   :  { %v388_v49 = vpop.xlane.xlu1 %387 }
 0x43f   :  { %v392_v50 = vmul.f32 %v388_v49, %v777_v29 }
 0x441   :  { %v566_v51 = vpop.eup %565  ;;  %v394_v52 = vadd.f32 1e-05, %v392_v50 }
 0x442   :  { %v407_v53 = vmul.f32 %v566_v51, %v395_v48  ;;  %vm413_vm9 = vweird.f32 %v566_v51 }
 0x443   :  { %567 = vrsqrt.f32 %v394_v52  ;;  %vm414_vm11 = vmor %vm412_vm10, %vm413_vm9  ;;  %vm402_vm13 = vweird.f32 %v394_v52 }
 0x444   :  { %v408_v54 = vmul.f32 %v566_v51, %v407_v53 }
 0x446   :  { %v409_v56 = vmul.f32 0.5, %v408_v54 }
 0x448   :  { %v410_v57 = vsub.f32 1.5, %v409_v56 }
 0x449   :  { %v568_v59 = vpop.eup %567 }
 0x44a   :  { %v411_v60 = vmul.f32 %v566_v51, %v410_v57  ;;  %v397_v61 = vmul.f32 %v568_v59, %v394_v52  ;;  %vm403_vm12 = vweird.f32 %v568_v59 }
 0x44b   :  { %vm404_vm14 = vmor %vm402_vm13, %vm403_vm12 }
 0x44c   :  { %v398_v63 = vmul.f32 %v568_v59, %v397_v61  ;;  %v415_v29 = vsel %vm414_vm11, %v566_v51, %v411_v60 }
 0x44d   :  { %v417_v0 = vmul.f32 %v415_v29, %v383_v34 }
 0x44e   :  { %v399_v1 = vmul.f32 0.5, %v398_v63 }
 0x44f   :  { %v419_v4 = vmul.f32 %v800_v58, %v417_v0 }
 0x450   :  { %v400_v5 = vsub.f32 1.5, %v399_v1 }
 0x451   :  { %v421_v6 = vadd.f32 %v805_v62, %v419_v4 }
 0x452   :  { %v401_v7 = vmul.f32 %v568_v59, %v400_v5 }
 0x453   :  { %445 = vmatpush.msrb.mxu2 %v421_v6 }
 0x454   :  { %v405_v8 = vsel %vm404_vm14, %v568_v59, %v401_v7 }
 0x455   :  { %v416_v9 = vmul.f32 %v405_v8, %v382_v39 }
 0x457   :  { %v418_v10 = vmul.f32 %v800_v58, %v416_v9  ;;  %v427_v58 = vld [vmem:[%s898_s11 + $0x8] sm:$0xff] }
 0x458   :  { %474 = vmatpush.msrb.mxu3 %v427_v58 }
 0x459   :  { %v420_v11 = vadd.f32 %v805_v62, %v418_v10  ;;  %v426_v62 = vld [vmem:[%s898_s11] sm:$0xff] }
 0x45a   :  { %475 = vmatpush.msrb.mxu3 %v426_v62 }
 0x45b   :  { %446 = vmatpush.msrb.mxu2 %v420_v11  ;;  %543 = vmatmul.msk.f32.vlgmr.msra.gmra.mxu0 %vm213_vm1, %v420_v11 }
 0x45c   :  { %539 = vmatmul.msk.f32.vlgmr.msrb.gmra.mxu2 %vm118_vm0, %v760_v2 }
 0x463   :  { %544 = vmatmul.msk.f32.gmra.mxu0 %vm213_vm1, %v421_v6 }
 0x464   :  { %540 = vmatmul.msk.f32.gmra.mxu2 %vm118_vm0, %v762_v3 }
 0x4d8   :  { %v506_v3 = vpop.f32.mrf.mxu0 }
 0x4df   :  { %v448_v2 = vpop.f32.mrf.mxu2 }
 0x4e0   :  { %541 = vmatmul.msk.f32.vlgmr.msrb.gmra.mxu3 %vm213_vm1, %v448_v2  ;;  %v509_v18 = vpop.f32.mrf.mxu0 }
 0x4e7   :  { %v451_v13 = vpop.f32.mrf.mxu2 }
 0x4e8   :  { %542 = vmatmul.msk.f32.gmra.mxu3 %vm213_vm1, %v451_v13 }
 0x563   :  { %v477_v15 = vpop.f32.mrf.mxu3 }
 0x564   :  { %v507_v16 = vadd.f32 %v506_v3, %v477_v15 }
 0x566   :  { %v515_v17 = vadd.f32 %v558_v14, %v507_v16 }
 0x568   :  { %518 = vst.msk [vmem:[%s900_s13] sm:$0xff] %vm517_vm15, %v515_v17 }
 0x56b   :  { %v480_v19 = vpop.f32.mrf.mxu3 }
 0x56c   :  { %v510_v20 = vadd.f32 %v509_v18, %v480_v19 }
 0x56e   :  { %v516_v21 = vadd.f32 %v558_v14, %v510_v20 }
 0x570   :  { %519 = vst.msk [vmem:[%s900_s13 + $0x8] sm:$0xff] %vm517_vm15, %v516_v21 }
 0x571   :  { %524 = vsyncpa [#allocation3], 1 }
 0x572   :  { %525 = vsyncpa [#allocation5], 1 }
 0x573   :  { %526 = vsyncpa [#allocation8], 1 }

</bundles_post_ra>
